<compile_context>
chip_gen: v7x
topology: tpu7x:2x2x1
jax: 0.10.0
libtpu: 0.0.40
codegen_flags: <defaults>
</compile_context>

<pallas_src>
import math

import jax
import jax.numpy as jnp
from jax.experimental import pallas as pl
from jax.experimental.pallas import tpu as pltpu


def _round_up(x, m):
    return ((x + m - 1) // m) * m


def _choose_tm(m, tm_default):
    """Row-tile choice: multiple of 8, and keep >= 2 row blocks whenever the
    (padded) row count allows it so the 'parallel' M axis can split across
    TensorCores (v7x has 2 TCs per chip)."""
    mp8 = _round_up(m, 8)
    if mp8 >= 16:
        return min(tm_default, _round_up(mp8 // 2, 8))
    return min(tm_default, mp8)


# ----------------------------------------------------------------------------
# Kernels
# ----------------------------------------------------------------------------
def _fused_concat_proj_kernel(x_ref, y_ref, wx_ref, wy_ref, b_ref, o_ref):
    """out = cat([x, y], -1) @ W.T + b, fused.

    x_ref : (tm, dx)   raw x features (dx is the true, tiny feature count)
    y_ref : (tm, dy)   raw y features
    wx_ref: (dx, Np)   weight rows for x, pre-transposed & N-padded at init
    wy_ref: (dy, Np)   weight rows for y
    b_ref : (1, Np)    bias
    o_ref : (tm, Np)   lane-dense output tile

    dx+dy is tiny (3 for LatentEncoder), so the contraction is unrolled into
    rank-1 VPU FMAs instead of driving the MXU with a 3-wide matmul.
    """
    dx = x_ref.shape[-1]
    dy = y_ref.shape[-1]
    x = x_ref[...].astype(jnp.float32)
    yv = y_ref[...].astype(jnp.float32)
    wx = wx_ref[...].astype(jnp.float32)
    wy = wy_ref[...].astype(jnp.float32)

    acc = x[:, 0:1] * wx[0:1, :]
    for k in range(1, dx):                      # static unroll, dx is tiny
        acc = acc + x[:, k:k + 1] * wx[k:k + 1, :]
    for k in range(dy):                         # static unroll, dy is tiny
        acc = acc + yv[:, k:k + 1] * wy[k:k + 1, :]
    acc = acc + b_ref[...].astype(jnp.float32)
    o_ref[...] = acc.astype(o_ref.dtype)


def _linear_resident_kernel(x_ref, w_ref, b_ref, o_ref):
    """y = x @ W + b with the whole (K, Np) weight resident in VMEM.

    1-D grid over M row tiles; weight/bias index_maps are constant so they are
    DMA'd once. No accumulator scratch, no pl.when branches.
    """
    acc = jnp.dot(x_ref[...], w_ref[...], preferred_element_type=jnp.float32)
    o_ref[...] = (acc + b_ref[...].astype(jnp.float32)).astype(o_ref.dtype)


def _linear_tiled_kernel(x_ref, w_ref, b_ref, o_ref, acc_ref):
    """Large-GEMM path: (tm,tk)@(tk,tn) MXU accumulate over the K grid axis.

    Weight is in (K, N) layout -> plain matmul, no per-step transpose.
    """
    k = pl.program_id(2)

    @pl.when(k == 0)
    def _():
        acc_ref[...] = jnp.zeros_like(acc_ref)

    acc_ref[...] += jnp.dot(x_ref[...], w_ref[...],
                            preferred_element_type=jnp.float32)

    @pl.when(k == pl.num_programs(2) - 1)
    def _():
        o_ref[...] = (acc_ref[...] + b_ref[...].astype(jnp.float32)
                      ).astype(o_ref.dtype)


# ----------------------------------------------------------------------------
# One-time parameter preparation (hoisted out of the per-call wrappers)
# ----------------------------------------------------------------------------
def prepare_concat_linear_params(weight, bias, x_dim):
    """For the fused cat([x, y]) -> Linear path.

    weight: (out_dim, in_dim) PyTorch layout, in_dim = x_dim + y_dim.
    Transposes to (in, out), pads out_dim to a multiple of 128 (lane-dense
    stores), and splits into the x-rows and y-rows once.
    """
    out_dim, in_dim = weight.shape
    np_ = _round_up(out_dim, 128)
    w_t = weight.T                                        # (in, out)
    if np_ != out_dim:
        w_t = jnp.pad(w_t, ((0, 0), (0, np_ - out_dim)))
    b2 = bias.reshape(1, out_dim)
    if np_ != out_dim:
        b2 = jnp.pad(b2, ((0, 0), (0, np_ - out_dim)))
    return dict(wx=w_t[:x_dim], wy=w_t[x_dim:], b=b2,
                x_dim=x_dim, y_dim=in_dim - x_dim,
                out_dim=out_dim, np_=np_)


def prepare_linear_params(weight, bias=None, *, force_tiled=False,
                          resident_max_bytes=4 << 20):
    """General nn.Linear prep: transpose to (in, out), pad N to 128.

    mode="resident": whole weight fits VMEM comfortably -> 1-D M grid kernel.
    mode="tiled"   : large GEMM -> 3-D grid with K padded to 128 at init.
    """
    out_dim, in_dim = weight.shape
    np_ = _round_up(out_dim, 128)
    w_t = weight.T                                        # (in, out)
    if np_ != out_dim:
        w_t = jnp.pad(w_t, ((0, 0), (0, np_ - out_dim)))
    if bias is None:
        b2 = jnp.zeros((1, np_), dtype=weight.dtype)
    else:
        b2 = bias.reshape(1, out_dim)
        if np_ != out_dim:
            b2 = jnp.pad(b2, ((0, 0), (0, np_ - out_dim)))
    itemsize = weight.dtype.itemsize
    resident = (not force_tiled) and (in_dim * np_ * itemsize <= resident_max_bytes)
    if resident:
        return dict(mode="resident", w=w_t, b=b2,
                    in_dim=in_dim, out_dim=out_dim, np_=np_)
    kp = _round_up(in_dim, 128)
    if kp != in_dim:
        w_t = jnp.pad(w_t, ((0, kp - in_dim), (0, 0)))
    return dict(mode="tiled", w=w_t, b=b2,
                in_dim=in_dim, out_dim=out_dim, np_=np_, kp=kp)


# ----------------------------------------------------------------------------
# Forward wrappers
# ----------------------------------------------------------------------------
def concat_linear_forward(x, y, params, *, tm=512):
    """Fused cat([x, y], -1) @ W.T + b."""
    dx, dy = params["x_dim"], params["y_dim"]
    out_dim, np_ = params["out_dim"], params["np_"]
    assert x.shape[-1] == dx and y.shape[-1] == dy
    lead = x.shape[:-1]
    m = math.prod(lead) if lead else 1

    tm = _choose_tm(m, tm)
    mp = _round_up(m, tm)
    x2 = x.reshape(m, dx)
    y2 = y.reshape(m, dy)
    if mp != m:
        x2 = jnp.pad(x2, ((0, mp - m), (0, 0)))
        y2 = jnp.pad(y2, ((0, mp - m), (0, 0)))

    isz = x.dtype.itemsize
    cost = pl.CostEstimate(
        flops=2 * m * (dx + dy) * out_dim,
        transcendentals=0,
        bytes_accessed=(m * (dx + dy) + (dx + dy) * out_dim + out_dim
                        + m * out_dim) * isz,
    )

    out = pl.pallas_call(
        _fused_concat_proj_kernel,
        out_shape=jax.ShapeDtypeStruct((mp, np_), x.dtype),
        grid_spec=pltpu.PrefetchScalarGridSpec(
            num_scalar_prefetch=0,
            grid=(mp // tm,),
            in_specs=[
                pl.BlockSpec((tm, dx), lambda i: (i, 0)),    # x rows
                pl.BlockSpec((tm, dy), lambda i: (i, 0)),    # y rows
                pl.BlockSpec((dx, np_), lambda i: (0, 0)),   # resident weight (x part)
                pl.BlockSpec((dy, np_), lambda i: (0, 0)),   # resident weight (y part)
                pl.BlockSpec((1, np_), lambda i: (0, 0)),    # resident bias
            ],
            out_specs=pl.BlockSpec((tm, np_), lambda i: (i, 0)),
        ),
        compiler_params=pltpu.CompilerParams(
            dimension_semantics=("parallel",)),
        cost_estimate=cost,
    )(x2, y2, params["wx"], params["wy"], params["b"])

    out = out[:m, :out_dim]
    return out.reshape(*lead, out_dim)


def linear_forward(params, x, *, tm=512, tn=512, tk=1024):
    """y = x @ W.T + b (nn.Linear semantics) from pre-prepared params."""
    in_dim, out_dim, np_ = params["in_dim"], params["out_dim"], params["np_"]
    lead = x.shape[:-1]
    m = math.prod(lead) if lead else 1
    x2 = x.reshape(m, in_dim)

    tm = _choose_tm(m, tm)
    mp = _round_up(m, tm)
    isz = x.dtype.itemsize
    cost = pl.CostEstimate(
        flops=2 * m * in_dim * out_dim,
        transcendentals=0,
        bytes_accessed=(m * in_dim + in_dim * out_dim + out_dim
                        + m * out_dim) * isz,
    )

    if params["mode"] == "resident":
        if mp != m:
            x2 = jnp.pad(x2, ((0, mp - m), (0, 0)))
        out = pl.pallas_call(
            _linear_resident_kernel,
            out_shape=jax.ShapeDtypeStruct((mp, np_), x.dtype),
            grid_spec=pltpu.PrefetchScalarGridSpec(
                num_scalar_prefetch=0,
                grid=(mp // tm,),
                in_specs=[
                    pl.BlockSpec((tm, in_dim), lambda i: (i, 0)),    # activations
                    pl.BlockSpec((in_dim, np_), lambda i: (0, 0)),   # resident weight
                    pl.BlockSpec((1, np_), lambda i: (0, 0)),        # resident bias
                ],
                out_specs=pl.BlockSpec((tm, np_), lambda i: (i, 0)),
            ),
            compiler_params=pltpu.CompilerParams(
                dimension_semantics=("parallel",)),
            cost_estimate=cost,
        )(x2, params["w"], params["b"])
    else:
        kp = params["kp"]
        tn = max(128, min(tn, np_))
        while np_ % tn:
            tn -= 128
        tk = max(128, min(tk, kp))
        while kp % tk:
            tk -= 128
        if (mp, kp) != (m, in_dim):
            x2 = jnp.pad(x2, ((0, mp - m), (0, kp - in_dim)))
        # Double-buffered footprint + acc scratch; set scoped VMEM explicitly
        # (v5e default scoped limit is only 16 MiB).
        needed = (2 * (tm * tk + tk * tn + tm * tn) * isz
                  + tm * tn * 4 + 2 * tn * isz)
        vmem_limit = int(min(max(32 << 20, needed + (8 << 20)), 56 << 20))
        out = pl.pallas_call(
            _linear_tiled_kernel,
            out_shape=jax.ShapeDtypeStruct((mp, np_), x.dtype),
            grid_spec=pltpu.PrefetchScalarGridSpec(
                num_scalar_prefetch=0,
                grid=(mp // tm, np_ // tn, kp // tk),
                in_specs=[
                    pl.BlockSpec((tm, tk), lambda i, j, k: (i, k)),  # activations
                    pl.BlockSpec((tk, tn), lambda i, j, k: (k, j)),  # weight (K, N)
                    pl.BlockSpec((1, tn), lambda i, j, k: (0, j)),   # bias
                ],
                out_specs=pl.BlockSpec((tm, tn), lambda i, j, k: (i, j)),
                scratch_shapes=[pltpu.VMEM((tm, tn), jnp.float32)],
            ),
            compiler_params=pltpu.CompilerParams(
                dimension_semantics=("parallel", "parallel", "arbitrary"),
                vmem_limit_bytes=vmem_limit),
            cost_estimate=cost,
        )(x2, params["w"], params["b"])

    out = out[:m, :out_dim]
    return out.reshape(*lead, out_dim)


# ----------------------------------------------------------------------------
# LatentEncoder forward (as given in the spec)
# ----------------------------------------------------------------------------
def latent_encoder_forward(params, x, y):
    """
    LatentEncoder.forward per the provided spec:
        encoder_input = cat([x, y], dim=-1)
        encoder_input = self.input_projection(encoder_input)
        for attention in self.self_attentions:
            pass                              # loop body is `pass` in the spec
    """
    encoder_input = concat_linear_forward(x, y, params["input_projection"])
    # TODO(synk): the self-attention loop body (Attention.forward is truncated in
    # the spec) and the downstream mean/penultimate/mu/log_sigma/reparameterization
    # tail are not given; only the fused concat + input_projection path is implemented.
    return encoder_input


# ----------------------------------------------------------------------------
# Parameter init matching the PyTorch module
# ----------------------------------------------------------------------------
def init_linear_params(key, in_dim, out_dim, w_init="linear", dtype=jnp.float32):
    """weight ~ xavier_normal_(gain=calculate_gain(w_init)),
       bias   ~ default nn.Linear uniform(-1/sqrt(in_dim), 1/sqrt(in_dim))."""
    gains = {"linear": 1.0, "relu": math.sqrt(2.0), "tanh": 5.0 / 3.0, "sigmoid": 1.0}
    gain = gains.get(w_init, 1.0)
    k_w, k_b = jax.random.split(key)
    std = gain * math.sqrt(2.0 / (in_dim + out_dim))
    weight = std * jax.random.normal(k_w, (out_dim, in_dim), dtype=dtype)
    bound = 1.0 / math.sqrt(in_dim)
    bias = jax.random.uniform(k_b, (out_dim,), dtype=dtype, minval=-bound, maxval=bound)
    return weight, bias


if __name__ == "__main__":
    key = jax.random.PRNGKey(0)
    k_x, k_y, k_p1, k_p2 = jax.random.split(key, 4)

    # --- (1) LatentEncoder path: fused cat + input_projection (input_dim=3 -> hidden=32)
    batch, seq, num_hidden = 2, 8, 32
    x_ctx = jax.random.normal(k_x, (batch, seq, 2), dtype=jnp.float32)
    y_ctx = jax.random.normal(k_y, (batch, seq, 1), dtype=jnp.float32)
    w_proj, b_proj = init_linear_params(k_p1, 3, num_hidden, w_init="linear")
    params = {"input_projection": prepare_concat_linear_params(w_proj, b_proj, x_dim=2)}

    enc = jax.block_until_ready(latent_encoder_forward(params, x_ctx, y_ctx))
    enc_ref = jnp.concatenate([x_ctx, y_ctx], axis=-1) @ w_proj.T + b_proj
    assert enc.shape == (batch, seq, num_hidden)
    assert jnp.allclose(enc, enc_ref, atol=1e-5, rtol=1e-5)

    # --- (2) Standalone Linear, VMEM-resident weight path (in=32 -> out=64)
    k_x2, k_p3 = jax.random.split(k_p2)
    x2 = jax.random.normal(k_x2, (batch, seq, 32), dtype=jnp.float32)
    w2, b2 = init_linear_params(k_p3, 32, 64, w_init="relu")
    p2 = prepare_linear_params(w2, b2)
    assert p2["mode"] == "resident"
    y2 = jax.block_until_ready(linear_forward(p2, x2))
    y2_ref = x2 @ w2.T + b2
    assert y2.shape == (batch, seq, 64)
    assert jnp.allclose(y2, y2_ref, atol=1e-5, rtol=1e-5)

    # --- (3) Exercise the tiled K-accumulation path (forced; grid = (2, 2, 2))
    k_x3, k_p4 = jax.random.split(k_p3)
    x3 = jax.random.normal(k_x3, (256, 256), dtype=jnp.float32)
    w3, b3 = init_linear_params(k_p4, 256, 256, w_init="linear")
    p3 = prepare_linear_params(w3, b3, force_tiled=True)
    assert p3["mode"] == "tiled"
    y3 = jax.block_until_ready(linear_forward(p3, x3, tm=128, tn=128, tk=128))
    y3_ref = x3 @ w3.T + b3
    assert jnp.allclose(y3, y3_ref, atol=1e-4, rtol=1e-4)

    print("KERNEL_OK")
</pallas_src>

<mosaic_0001>
module attributes {stable_mosaic.version = 11 : i64} {
  func.func @_fused_concat_proj_kernel(%arg0: i32, %arg1: memref<8x2xf32, #tpu.memory_space<vmem>>, %arg2: memref<8x1xf32, #tpu.memory_space<vmem>>, %arg3: memref<2x128xf32, #tpu.memory_space<vmem>>, %arg4: memref<1x128xf32, #tpu.memory_space<vmem>>, %arg5: memref<1x128xf32, #tpu.memory_space<vmem>>, %arg6: memref<8x128xf32, #tpu.memory_space<vmem>>) attributes {dimension_semantics = [#tpu.dimension_semantics<parallel>], iteration_bounds = array<i64: 2>, scalar_prefetch = 0 : i64, scratch_operands = 0 : i64, tpu.core_type = #tpu.core_type<tc>, window_params = [{transform_indices = @transform_0, window_bounds = array<i64: 8, 2>}, {transform_indices = @transform_1, window_bounds = array<i64: 8, 1>}, {pipeline_mode = #tpu.pipeline_mode<synchronous>, transform_indices = @transform_2, window_bounds = array<i64: 2, 128>}, {pipeline_mode = #tpu.pipeline_mode<synchronous>, transform_indices = @transform_3, window_bounds = array<i64: 1, 128>}, {pipeline_mode = #tpu.pipeline_mode<synchronous>, transform_indices = @transform_4, window_bounds = array<i64: 1, 128>}, {transform_indices = @transform_5, window_bounds = array<i64: 8, 128>}]} {
    %c0 = arith.constant 0 : index
    %c0_0 = arith.constant 0 : index
    %0 = vector.load %arg1[%c0, %c0_0] : memref<8x2xf32, #tpu.memory_space<vmem>>, vector<8x2xf32>
    %c0_1 = arith.constant 0 : index
    %c0_2 = arith.constant 0 : index
    %1 = vector.load %arg2[%c0_1, %c0_2] : memref<8x1xf32, #tpu.memory_space<vmem>>, vector<8x1xf32>
    %c0_3 = arith.constant 0 : index
    %c0_4 = arith.constant 0 : index
    %2 = vector.load %arg3[%c0_3, %c0_4] : memref<2x128xf32, #tpu.memory_space<vmem>>, vector<2x128xf32>
    %c0_5 = arith.constant 0 : index
    %c0_6 = arith.constant 0 : index
    %3 = vector.load %arg4[%c0_5, %c0_6] : memref<1x128xf32, #tpu.memory_space<vmem>>, vector<1x128xf32>
    %4 = vector.extract_strided_slice %0 {offsets = [0, 0], sizes = [8, 1], strides = [1, 1]} : vector<8x2xf32> to vector<8x1xf32>
    %5 = vector.extract_strided_slice %2 {offsets = [0, 0], sizes = [1, 128], strides = [1, 1]} : vector<2x128xf32> to vector<1x128xf32>
    %6 = vector.broadcast %4 : vector<8x1xf32> to vector<8x128xf32>
    %7 = vector.broadcast %5 : vector<1x128xf32> to vector<8x128xf32>
    %8 = arith.mulf %6, %7 : vector<8x128xf32>
    %9 = vector.extract_strided_slice %0 {offsets = [0, 1], sizes = [8, 1], strides = [1, 1]} : vector<8x2xf32> to vector<8x1xf32>
    %10 = vector.extract_strided_slice %2 {offsets = [1, 0], sizes = [1, 128], strides = [1, 1]} : vector<2x128xf32> to vector<1x128xf32>
    %11 = vector.broadcast %9 : vector<8x1xf32> to vector<8x128xf32>
    %12 = vector.broadcast %10 : vector<1x128xf32> to vector<8x128xf32>
    %13 = arith.mulf %11, %12 : vector<8x128xf32>
    %14 = arith.addf %8, %13 : vector<8x128xf32>
    %15 = vector.broadcast %1 : vector<8x1xf32> to vector<8x128xf32>
    %16 = vector.broadcast %3 : vector<1x128xf32> to vector<8x128xf32>
    %17 = arith.mulf %15, %16 : vector<8x128xf32>
    %18 = arith.addf %14, %17 : vector<8x128xf32>
    %c0_7 = arith.constant 0 : index
    %c0_8 = arith.constant 0 : index
    %19 = vector.load %arg5[%c0_7, %c0_8] : memref<1x128xf32, #tpu.memory_space<vmem>>, vector<1x128xf32>
    %20 = vector.broadcast %19 : vector<1x128xf32> to vector<8x128xf32>
    %21 = arith.addf %18, %20 : vector<8x128xf32>
    %c0_9 = arith.constant 0 : index
    %c0_10 = arith.constant 0 : index
    %22 = vector.load %arg6[%c0_9, %c0_10] : memref<8x128xf32, #tpu.memory_space<vmem>>, vector<8x128xf32>
    tpu.vector_store %arg6[%c0_9, %c0_10], %21 {strides = array<i32>} : memref<8x128xf32, #tpu.memory_space<vmem>>, vector<8x128xf32>,
    return
  }
  func.func @transform_0(%arg0: i32) -> (i32, i32) {
    %c0_i32 = arith.constant 0 : i32
    %c0_i32_0 = arith.constant 0 : i32
    return %arg0, %c0_i32 : i32, i32
  }
  func.func @transform_1(%arg0: i32) -> (i32, i32) {
    %c0_i32 = arith.constant 0 : i32
    %c0_i32_0 = arith.constant 0 : i32
    return %arg0, %c0_i32 : i32, i32
  }
  func.func @transform_2(%arg0: i32) -> (i32, i32) {
    %c0_i32 = arith.constant 0 : i32
    %c0_i32_0 = arith.constant 0 : i32
    %c0_i32_1 = arith.constant 0 : i32
    return %c0_i32, %c0_i32_0 : i32, i32
  }
  func.func @transform_3(%arg0: i32) -> (i32, i32) {
    %c0_i32 = arith.constant 0 : i32
    %c0_i32_0 = arith.constant 0 : i32
    %c0_i32_1 = arith.constant 0 : i32
    return %c0_i32, %c0_i32_0 : i32, i32
  }
  func.func @transform_4(%arg0: i32) -> (i32, i32) {
    %c0_i32 = arith.constant 0 : i32
    %c0_i32_0 = arith.constant 0 : i32
    %c0_i32_1 = arith.constant 0 : i32
    return %c0_i32, %c0_i32_0 : i32, i32
  }
  func.func @transform_5(%arg0: i32) -> (i32, i32) {
    %c0_i32 = arith.constant 0 : i32
    %c0_i32_0 = arith.constant 0 : i32
    return %arg0, %c0_i32 : i32, i32
  }
}

</mosaic_0001>

<bundles_post_ra>
// kernel: tpu_custom_call.1
= control target key start
LH: loop header
LB: loop body
LE: loop exit
PB: predicated region body
PF: predicated region fallthrough
CT: control target
= control target key end

     0   :  { %10 = vsyncpa [#allocation3], 0  ;;  %s635_s0 = inlined_call_operand.vmem [shape: f32[16,2], index: 0, kind: input, shape index: {}]   ;;  %s636_s1 = inlined_call_operand.vmem [shape: f32[16,1], index: 1, kind: input, shape index: {}]   ;;  %s637_s2 = inlined_call_operand.vmem [shape: f32[2,128], index: 2, kind: input, shape index: {}]   ;;  %s638_s3 = inlined_call_operand.vmem [shape: f32[1,128], index: 3, kind: input, shape index: {}]   ;;  %s639_s4 = inlined_call_operand.vmem [shape: f32[1,128], index: 4, kind: input, shape index: {}]   ;;  %s640_s5 = inlined_call_operand.hbm [shape: f32[16,128], index: 5, kind: output, shape index: {}]  }
   0x1   :  { %12 = vsyncpa [#allocation3 + $0x1], 0  ;;  %s523_s18 = smov 0   ;;  %s525_s19 = smov 0  }
   0x2   :  { %s527_s20 = smov 0   ;;  %s529_s21 = smov 0  }
   0x3 LB: > { %s544_s22 = sadd.s32 4294967295, %s488_s21   ;;  %s368_s23 = sadd.s32 4294967294, %s488_s21   ;;  %s488_s21 = sphi %s529_s21, %s646_s21   ;;  %s484_s20 = sphi %s527_s20, %s645_s20   ;;  %s480_s19 = sphi %s525_s19, %s644_s19   ;;  %s476_s18 = sphi %s523_s18, %s643_s18  }
   0x4   : > { %s548_s24 = sadd.s32 1, %s488_s21   ;;  %s140_s25 = sadd.s32 1, %s484_s20 }
   0x5   : > { %s137_s26 = ssub.s32 %s488_s21, %s548_s24  ;;  %p150_p0 = scmp.ne.s32.totalorder %s484_s20, %s480_s19 }
   0x6   : > { %p138_p1 = scmp.eq.s32.totalorder %s137_s26, 0  ;;  %p151_p2 = scmp.eq.s32.totalorder %s544_s22, 1 }
   0x7   : > { %p156_p3 = scmp.ne.s32.totalorder %s480_s19, %s476_s18  ;;  %p157_p4 = scmp.eq.s32.totalorder %s368_s23, 1 }
   0x8   : > { %s559_s27 = scalar_select %p138_p1, %s484_s20, %s140_s25  }
   0x9   : > { %p561_p5 = por %p151_p2, %p150_p0  ;;  %p565_p6 = por %p157_p4, %p156_p3 }
   0xa   : > { %p371_p7 = scmp.ge.s32.totalorder %s488_s21, 1  ;;  %p198_p8 = scmp.lt.s32.totalorder %s488_s21, 3 }
   0xc   : > { %p199_p9 = pnand %p371_p7, %p198_p8 }
   0xd   : > { %p229_p10 = scmp.lt.s32.totalorder (!%p199_p9), %s544_s22, 1  ;;  %v490_v0 = vmov (!%p199_p9), 0   ;;  %v491_v3 = vmov (!%p199_p9), 1   ;;  %v246_v4 = vlaneseq (!%p199_p9)  ;;  %v239_v8 = vld [vmem:[%s637_s2] sm:$0x3] (!%p199_p9)  ;;  %s226_s15 = sand.u32 (!%p199_p9), 1, %s480_s19  }
   0xe   : > { %202 = sbr.rel (%p199_p9) target bundleno = 181 (0xb5), region = 40  ;;  %422 = vset.pattern.permute.xlu0 (!%p199_p9), %v490_v0  ;;  %424 = vset.pattern.permute.xlu1 (!%p199_p9), %v490_v0  ;;  %v375_v12 = vld [vmem:[%s638_s3] ss:$0 sm:$0xff] (!%p199_p9)  ;;  %s372_s23 = sshll.u32 (!%p199_p9), %s226_s15, 3 }
   0xf   : > { %v247_v5 = vshrl.u32 (!%p199_p9), %v246_v4, 7  ;;  %v376_v19 = vld [vmem:[%s639_s4] ss:$0 sm:$0xff] (!%p199_p9)  ;;  %s284_s11 = scalar_lea.sflag (!%p199_p9), [#allocation3], %s226_s15 }
  0x11   : > { %v248_v6 = vsub.s32 (!%p199_p9), 0, %v247_v5  ;;  %v257_v7 = vsub.s32 (!%p199_p9), 1, %v247_v5 }
  0x13   : > { %v249_v10 = vrot.slane (!%p199_p9), %v239_v8, %v248_v6  ;;  %v258_v11 = vrot.slane (!%p199_p9), %v239_v8, %v257_v7 }
  0x15   : > { %s230_s30 = scalar_select %p229_p10, %s544_s22, 1 }
  0x17   : > { %s373_s6 = sshll.u32 %s230_s30, 3  ;;  %s378_s30 = sshll.u32 %s544_s22, 7 }
  0x18   : > { %s232_s9 = scalar_lea.vmem %s635_s0, %s373_s6  ;;  %s236_s12 = scalar_lea.vmem %s636_s1, %s373_s6 }
  0x19   : > { %v237_v1 = vld [vmem:[%s232_s9] sm:$0xff]  ;;  %s228_s6 = scalar_lea.vmem [#allocation2], %s372_s23  ;;  %s593_s10 = scalar_lea.hbm %s640_s5, %s378_s30 }
  0x1a   : > { %v238_v2 = vld [vmem:[%s236_s12] sm:$0xff]  ;;  %243 = vperm.xlu0 %422, %v237_v1   ;;  %s297_s7 = sshll.u32 %s228_s6, 4  ;;  %s492_s22 = smov [#allocation2]   ;;  %s595_s7 = int_to_ptr.vmem [resolvable:$true] %s297_s7 }
  0x1b   : > { %263 = vperm.xlu1 %424, %v238_v2   ;;  %s426_s12 = scalar_lea.vmem %s595_s7, 128  ;;  %s430_s13 = sshll.u32 %s492_s22, 4  ;;  %s431_s13 = int_to_ptr.vmem [resolvable:$false] %s430_s13 }
  0x1c   : > { %p427_p11 = scmp.ne.s32.totalorder %s595_s7, %s426_s12  ;;  %s432_s14 = scalar_lea.vmem %s431_s13, 256 }
  0x1d   : > { %p433_p0 = scmp.lt.s32.totalorder %s595_s7, %s431_s13  ;;  %p434_p1 = scmp.lt.s32.totalorder %s432_s14, %s426_s12 }
  0x1e   : > { %423 = vset.pattern.permute.xlu0 %v491_v3  ;;  %p428_p12 = pnand %p427_p11, %p561_p5 }
  0x1f   : > { %252 = vperm.xlu0 %423, %v237_v1   ;;  %p435_p2 = por %p434_p1, %p433_p0 }
  0x20   : > { %p429_p13 = pneg %p428_p12 }
  0x22   : > { %p436_p3 = pnand %p435_p2, %p429_p13 }
  0x23   : > { %425 = vset.pattern.permute.xlu0 %v490_v0 }
  0x99   : > { %v244_v9 = vpop.permute.xlu0 %243 }
  0x9a   : > { %v264_v13 = vpop.permute.xlu1 %263  ;;  %v250_v15 = vmul.f32 %v249_v10, %v244_v9 }
  0x9b   : > { %v272_v17 = vmul.f32 %v375_v12, %v264_v13 }
  0x9e   : > { %v253_v14 = vpop.permute.xlu0 %252 }
  0x9f   : > { %v259_v16 = vmul.f32 %v258_v11, %v253_v14 }
  0xa1   : > { %v260_v18 = vadd.f32 %v259_v16, %v250_v15 }
  0xa3   : > { %v273_v20 = vadd.f32 %v272_v17, %v260_v18 }
  0xa5   : > { %v281_v21 = vadd.f32 %v376_v19, %v273_v20 }
  0xa7   : > { %282 = vst [vmem:[%s228_s6] sm:$0xff] %v281_v21 }
  0xa8   : > { %439 = shalt.err (!%p436_p3)
}
  0xa9   : > { %s440_s15 = scalar_lea.hbm %s593_s10, 128  ;;  %s444_s23 = scalar_lea.hbm %s640_s5, 256 }
  0xaa   : > { %p441_p4 = scmp.ne.s32.totalorder %s593_s10, %s440_s15  ;;  %p445_p9 = scmp.lt.u32.totalorder %s593_s10, %s640_s5 }
  0xab   : > { %p446_p10 = scmp.lt.u32.totalorder %s444_s23, %s440_s15  ;;  %p448_p12 = scmp.lt.u32.totalorder %s440_s15, %s593_s10 }
  0xac   : > { %p442_p7 = pnand %p441_p4, %p561_p5 }
  0xad   : > { %p447_p11 = por %p446_p10, %p445_p9 }
  0xae   : > { %p443_p8 = pneg %p442_p7 }
  0xaf   : > { %p449_p13 = por %p448_p12, %p447_p11 }
  0xb1   : > { %p450_p0 = pnand %p449_p13, %p443_p8 }
  0xb3   : > { %453 = shalt.err (!%p450_p0)
}
  0xb4   : > { %381 = dma.vmem_to_hbm [thread:$0]  (%p561_p5), %s595_s7, 128, %s593_s10, %s284_s11  }
  0xb5 PF: > { %p387_p1 = scmp.ge.s32.totalorder %s488_s21, 2  ;;  %s309_s30 = sand.u32 1, %s476_s18  }
  0xb6   : > { %s310_s6 = scalar_lea.sflag [#allocation3], %s309_s30 }
  0xb7   : > { %p384_p2 = pnand %p387_p1, %p565_p6 }
  0xb9   : > { %471 = dma.done.wait (!%p384_p2), %s310_s6, 128  }
  0xba   : > { %473 = vsyncadd (!%p384_p2), %s310_s6, 4294967168  ;;  %p15_p3 = scmp.ge.s32.totalorder %s548_s24, 4   ;;  %s643_s18 = smov %s480_s19 }
  0xbb   : > { %s644_s19 = smov %s484_s20  ;;  %s645_s20 = smov %s559_s27 }
  0xbc   : > { %s646_s21 = smov %s548_s24  ;;  %17 = sbr.rel (!%p15_p3) target bundleno = 3 (0x3), region = 78 }
  0xc3   :  { %315 = vsyncpa [#allocation3], 1 }
  0xc4   :  { %317 = vsyncpa [#allocation3 + $0x1], 1 }

</bundles_post_ra>
